<compile_context>
chip_gen: v6e
topology: v6e:2x2x1
jax: 0.10.0
libtpu: 0.0.40
codegen_flags: <defaults>
</compile_context>

<pallas_src>
import functools
import math

import jax
import jax.numpy as jnp
from jax.experimental import pallas as pl
from jax.experimental.pallas import tpu as pltpu


def _round_up(x: int, m: int) -> int:
    return ((x + m - 1) // m) * m


def _build_pe(d_model: int, max_len: int = 5000, dtype=jnp.float32) -> jnp.ndarray:
    """Sinusoidal PE buffer, shape (max_len, 1, d_model) — same math as the PyTorch module.

    Unlike the classic PyTorch snippet this also handles odd d_model (cos half is
    sliced to d_model // 2 columns instead of raising a shape error).
    """
    position = jnp.arange(0, max_len, dtype=jnp.float32)[:, None]               # (max_len, 1)
    div_term = jnp.exp(
        jnp.arange(0, d_model, 2, dtype=jnp.float32) * (-math.log(10000.0) / d_model)
    )                                                                            # (ceil(D/2),)
    angles = position * div_term                                                 # (max_len, ceil(D/2))
    pe = jnp.zeros((max_len, d_model), dtype=jnp.float32)
    pe = pe.at[:, 0::2].set(jnp.sin(angles))
    pe = pe.at[:, 1::2].set(jnp.cos(angles)[:, : d_model // 2])
    return pe[:, None, :].astype(dtype)                                          # (max_len, 1, D)


def _add_pe_kernel_2d(x_ref, pe_ref, o_ref, *, batch: int):
    # x_ref/o_ref: (ts, B*D) lane-dense; pe_ref: (ts, D).
    pe = pe_ref[...]
    if batch > 1:
        # Lane-axis repeat of the pe row for each batch entry — matches the (S, B*D)
        # row layout [x[s,0,:], x[s,1,:], ...]; cheap vreg copies, no extra HBM traffic.
        pe = jnp.concatenate([pe] * batch, axis=-1)
    o_ref[...] = x_ref[...] + pe


def _add_pe_kernel_3d(x_ref, pe_ref, o_ref):
    # x_ref/o_ref: (ts, B, D); pe_ref: (ts, 1, D) — broadcast-add over batch on the VPU.
    o_ref[...] = x_ref[...] + pe_ref[...]


def _num_tensorcores() -> int:
    try:
        return max(1, int(getattr(jax.devices()[0], "num_cores", 1)))
    except Exception:  # pragma: no cover - defensive
        return 1


def _pick_seq_tile(S: int, row_bytes: int, budget_bytes: int, min_steps: int,
                   max_rows: int = 1024) -> int:
    """Sequence-tile rows so double-buffered (x + out + pe), padding included, fit budget."""
    ts = max(1, budget_bytes // max(1, row_bytes))
    ts = min(ts, max_rows, S)             # streaming add saturates HBM well before 1024 rows
    if min_steps > 1:                     # >=2 grid steps per TensorCore on multi-TC chips
        ts = min(ts, pl.cdiv(S, min_steps))
    if S >= 8:
        ts = max(8, (ts // 8) * 8)        # keep the block's sublane dim 8-aligned
    else:
        ts = S                            # tiny S: single full-extent block
    return ts


def positional_encoding_forward(
    x: jnp.ndarray,
    pe: jnp.ndarray,
    *,
    vmem_limit_bytes: int = 32 * 1024 * 1024,
    in_place: bool = False,
) -> jnp.ndarray:
    """x: (S, B, D); pe: (max_len, 1, D). Returns x + pe[:S] (broadcast over batch)."""
    S, B, D = x.shape
    assert pe.ndim == 3 and pe.shape[1] == 1 and pe.shape[2] == D and pe.shape[0] >= S

    if pe.dtype != x.dtype:
        # Cast only the rows actually used — never re-cast the whole max_len buffer.
        pe = pe[:S].astype(x.dtype)
    if S < 8 and pe.shape[0] != S:
        # Tiny-S: make block extents equal the full array dims on both operands.
        pe = pe[:S]

    itemsize = jnp.dtype(x.dtype).itemsize
    sublanes = 8 * max(1, 4 // itemsize)        # f32: 8, bf16: 16, int8: 32
    lane_d = _round_up(D, 128)

    cores = _num_tensorcores()
    min_steps = 2 * cores if cores > 1 else 1
    budget = (vmem_limit_bytes * 3) // 4        # headroom for Mosaic internal scratch

    io_alias = {0: 0} if in_place else {}
    compiler_params = pltpu.CompilerParams(
        dimension_semantics=("parallel",),
        vmem_limit_bytes=vmem_limit_bytes,      # keep <= 32 MiB: safe on v7x's 64 MiB/TC VMEM
    )

    # Lane-dense collapsed path for small batch (B would otherwise waste sublanes).
    collapse = (B < sublanes) and (D % 128 == 0)

    if collapse:
        lane_x = _round_up(B * D, 128)
        # Double-buffered x-in + out + pe bytes per sequence row (lane-padded).
        row_bytes = 2 * (2 * lane_x + lane_d) * itemsize
        ts = _pick_seq_tile(S, row_bytes, budget, min_steps)
        grid = (pl.cdiv(S, ts),)

        x2 = x.reshape(S, B * D)                # contiguous -> free reshape (bitcast)
        pe2 = pe.reshape(pe.shape[0], D)

        out2 = pl.pallas_call(
            functools.partial(_add_pe_kernel_2d, batch=B),
            out_shape=jax.ShapeDtypeStruct((S, B * D), x.dtype),
            grid_spec=pltpu.PrefetchScalarGridSpec(
                num_scalar_prefetch=0,
                grid=grid,
                in_specs=[
                    pl.BlockSpec((ts, B * D), lambda i: (i, 0)),
                    # Window straight into the (max_len, D) buffer: only ~S rows DMA'd,
                    # no wrapper slice/copy of pe.
                    pl.BlockSpec((ts, D), lambda i: (i, 0)),
                ],
                out_specs=pl.BlockSpec((ts, B * D), lambda i: (i, 0)),
            ),
            input_output_aliases=io_alias,
            compiler_params=compiler_params,
        )(x2, pe2)
        return out2.reshape(S, B, D)

    # Large-batch path: B already fills the sublanes; native 3-D broadcast add.
    row_bytes = 2 * (2 * _round_up(B, sublanes) + sublanes) * lane_d * itemsize
    ts = _pick_seq_tile(S, row_bytes, budget, min_steps)
    grid = (pl.cdiv(S, ts),)

    return pl.pallas_call(
        _add_pe_kernel_3d,
        out_shape=jax.ShapeDtypeStruct((S, B, D), x.dtype),
        grid_spec=pltpu.PrefetchScalarGridSpec(
            num_scalar_prefetch=0,
            grid=grid,
            in_specs=[
                pl.BlockSpec((ts, B, D), lambda i: (i, 0, 0)),
                pl.BlockSpec((ts, 1, D), lambda i: (i, 0, 0)),
            ],
            out_specs=pl.BlockSpec((ts, B, D), lambda i: (i, 0, 0)),
        ),
        input_output_aliases=io_alias,
        compiler_params=compiler_params,
    )(x, pe)


if __name__ == "__main__":
    # Small shapes implied by the forward: x is (seq, batch, d_model).
    # D = 128 keeps the stored last dim lane-dense (full 128-lane unmasked stores).
    S, B, D = 16, 2, 128
    key = jax.random.PRNGKey(0)
    x = jax.random.normal(key, (S, B, D), dtype=jnp.float32)

    # Built once, in the activation dtype (module __init__ analogue): no per-call cast.
    pe = _build_pe(d_model=D, max_len=5000, dtype=x.dtype)

    out = jax.block_until_ready(positional_encoding_forward(x, pe))

    # Reference in plain JAX (same math as the PyTorch module).
    ref = x + pe[:S]
    assert out.shape == (S, B, D)
    assert jnp.allclose(out, ref, atol=1e-6), "mismatch vs reference"

    print("KERNEL_OK")
</pallas_src>

<mosaic_0001>
module attributes {stable_mosaic.version = 11 : i64} {
  func.func @_add_pe_kernel_2d(%arg0: i32, %arg1: memref<16x256xf32, #tpu.memory_space<vmem>>, %arg2: memref<16x128xf32, #tpu.memory_space<vmem>>, %arg3: memref<16x256xf32, #tpu.memory_space<vmem>>) attributes {dimension_semantics = [#tpu.dimension_semantics<parallel>], iteration_bounds = array<i64: 1>, scalar_prefetch = 0 : i64, scratch_operands = 0 : i64, tpu.core_type = #tpu.core_type<tc>, window_params = [{transform_indices = @transform_0, window_bounds = array<i64: 16, 256>}, {transform_indices = @transform_1, window_bounds = array<i64: 16, 128>}, {transform_indices = @transform_2, window_bounds = array<i64: 16, 256>}]} {
    %c0 = arith.constant 0 : index
    %c0_0 = arith.constant 0 : index
    %0 = vector.load %arg2[%c0, %c0_0] : memref<16x128xf32, #tpu.memory_space<vmem>>, vector<16x128xf32>
    %1 = tpu.concatenate %0, %0 in 1 : vector<16x128xf32>, vector<16x128xf32> -> vector<16x256xf32>
    %c0_1 = arith.constant 0 : index
    %c0_2 = arith.constant 0 : index
    %2 = vector.load %arg1[%c0_1, %c0_2] : memref<16x256xf32, #tpu.memory_space<vmem>>, vector<16x256xf32>
    %3 = arith.addf %2, %1 : vector<16x256xf32>
    %c0_3 = arith.constant 0 : index
    %c0_4 = arith.constant 0 : index
    %4 = vector.load %arg3[%c0_3, %c0_4] : memref<16x256xf32, #tpu.memory_space<vmem>>, vector<16x256xf32>
    tpu.vector_store %arg3[%c0_3, %c0_4], %3 {strides = array<i32>} : memref<16x256xf32, #tpu.memory_space<vmem>>, vector<16x256xf32>,
    return
  }
  func.func @transform_0(%arg0: i32) -> (i32, i32) {
    %c0_i32 = arith.constant 0 : i32
    %c0_i32_0 = arith.constant 0 : i32
    return %arg0, %c0_i32 : i32, i32
  }
  func.func @transform_1(%arg0: i32) -> (i32, i32) {
    %c0_i32 = arith.constant 0 : i32
    %c0_i32_0 = arith.constant 0 : i32
    return %arg0, %c0_i32 : i32, i32
  }
  func.func @transform_2(%arg0: i32) -> (i32, i32) {
    %c0_i32 = arith.constant 0 : i32
    %c0_i32_0 = arith.constant 0 : i32
    return %arg0, %c0_i32 : i32, i32
  }
}

</mosaic_0001>

<bundles_post_ra>
// kernel: tpu_custom_call.1
= control target key start
LH: loop header
LB: loop body
LE: loop exit
PB: predicated region body
PF: predicated region fallthrough
CT: control target
= control target key end

     0   :  { %7 = vsyncpa [#allocation3], 0  ;;  %s182_s0 = inlined_call_operand.hbm [shape: f32[16,256], index: 0, kind: input, shape index: {}]   ;;  %s183_s1 = inlined_call_operand.hbm [shape: f32[5000,128], index: 1, kind: input, shape index: {}]   ;;  %s184_s2 = inlined_call_operand.hbm [shape: f32[16,256], index: 2, kind: output, shape index: {}]  }
   0x1   :  { %8 = vsyncpa [#allocation6], 0 }
   0x2   :  { %9 = vsyncpa [#allocation4], 0  ;;  %s145_s9 = smov [#allocation2]  }
   0x3   :  { %s15_s10 = sshll.u32 %s145_s9, 4  ;;  %s16_s10 = int_to_ptr.vmem [resolvable:$true] %s15_s10 }
   0x4   :  { %s87_s11 = scalar_lea.vmem %s16_s10, 512  ;;  %p92_p1 = scmp.lt.s32.totalorder %s16_s10, %s16_s10 }
   0x5   :  { %p88_p0 = scmp.ne.s32.totalorder %s16_s10, %s87_s11  ;;  %p93_p2 = scmp.lt.s32.totalorder %s87_s11, %s87_s11 }
   0x7   :  { %p94_p3 = por %p93_p2, %p92_p1 }
   0x9   :  { %p95_p4 = pnand %p94_p3, %p88_p0 }
   0xb   :  { %98 = shalt.err (!%p95_p4)
}
   0xc   :  { %s146_s12 = smov 256   ;;  %s147_s13 = smov 16  }
   0xd   :  { %21 = dma.hbm_to_vmem [thread:$0]  %s182_s0, 512, %s16_s10, [#allocation3], %s146_s12, %s146_s12, %s147_s13  }
   0xe   :  { %s148_s16 = smov [#allocation5]  }
   0xf   :  { %s27_s17 = sshll.u32 %s148_s16, 4  ;;  %s28_s17 = int_to_ptr.vmem [resolvable:$true] %s27_s17 }
  0x10   :  { %s107_s18 = scalar_lea.vmem %s28_s17, 256  ;;  %p112_p6 = scmp.lt.s32.totalorder %s28_s17, %s28_s17 }
  0x11   :  { %p108_p5 = scmp.ne.s32.totalorder %s28_s17, %s107_s18  ;;  %p113_p7 = scmp.lt.s32.totalorder %s107_s18, %s107_s18 }
  0x13   :  { %p114_p8 = por %p113_p7, %p112_p6 }
  0x15   :  { %p115_p9 = pnand %p114_p8, %p108_p5 }
  0x17   :  { %118 = shalt.err (!%p115_p9)
}
  0x18   :  { %s149_s19 = smov 128   ;;  %s150_s20 = smov 8  }
  0x19   :  { %33 = dma.hbm_to_vmem [thread:$0]  %s183_s1, 256, %s28_s17, [#allocation6], %s149_s19, %s149_s19, %s150_s20  }
  0x1a   :  { %139 = dma.done.wait [#allocation3], 512  }
  0x1b   :  { %140 = vsyncadd [#allocation3], 4294966784 }
  0x1c   :  { %141 = dma.done.wait [#allocation6], 256  }
  0x1d   :  { %142 = vsyncadd [#allocation6], 4294967040  ;;  %s151_s0 = smov [#allocation7]   ;;  %v40_v0 = vld [vmem:[#allocation5] sm:$0xff]  ;;  %v43_v2 = vld [vmem:[#allocation2 + $0x8] sm:$0xff] }
  0x1e   :  { %s59_s23 = sshll.u32 %s151_s0, 4  ;;  %v42_v1 = vld [vmem:[#allocation2] sm:$0xff]  ;;  %v47_v4 = vadd.f32 %v43_v2, %v40_v0  ;;  %v41_v5 = vld [vmem:[#allocation5 + $0x8] sm:$0xff]  ;;  %v44_v6 = vld [vmem:[#allocation2 + $0x10] sm:$0xff]  ;;  %s60_s23 = int_to_ptr.vmem [resolvable:$true] %s59_s23 }
  0x1f   :  { %v46_v3 = vadd.f32 %v42_v1, %v40_v0  ;;  %v45_v7 = vld [vmem:[#allocation2 + $0x18] sm:$0xff]  ;;  %v48_v8 = vadd.f32 %v44_v6, %v41_v5  ;;  %s119_s1 = scalar_lea.vmem %s60_s23, 512  ;;  %p124_p11 = scmp.lt.s32.totalorder %s60_s23, %s60_s23 }
  0x20   :  { %v49_v9 = vadd.f32 %v45_v7, %v41_v5  ;;  %51 = vst [vmem:[#allocation7 + $0x8] sm:$0xff] %v47_v4  ;;  %p120_p10 = scmp.ne.s32.totalorder %s60_s23, %s119_s1  ;;  %p125_p12 = scmp.lt.s32.totalorder %s119_s1, %s119_s1 }
  0x21   :  { %50 = vst [vmem:[#allocation7] sm:$0xff] %v46_v3  ;;  %52 = vst [vmem:[#allocation7 + $0x10] sm:$0xff] %v48_v8 }
  0x22   :  { %53 = vst [vmem:[#allocation7 + $0x18] sm:$0xff] %v49_v9  ;;  %p126_p13 = por %p125_p12, %p124_p11 }
  0x24   :  { %p127_p0 = pnand %p126_p13, %p120_p10 }
  0x26   :  { %130 = shalt.err (!%p127_p0)
}
  0x27   :  { %65 = dma.vmem_to_hbm [thread:$0]  %s60_s23, 512, %s184_s2, [#allocation4], %s146_s12, %s146_s12, %s147_s13  }
  0x28   :  { %143 = dma.done.wait [#allocation4], 512  }
  0x29   :  { %144 = vsyncadd [#allocation4], 4294966784 }
  0x2a   :  { %69 = vsyncpa [#allocation3], 1 }
  0x2b   :  { %70 = vsyncpa [#allocation6], 1 }
  0x2c   :  { %71 = vsyncpa [#allocation4], 1 }

</bundles_post_ra>
